<compile_context>
chip_gen: v6e
topology: v6e:2x2x1
jax: 0.10.0
libtpu: 0.0.40
codegen_flags: <defaults>
</compile_context>

<pallas_src>
import math

import jax
import jax.numpy as jnp
import numpy as np
from jax.experimental import pallas as pl
from jax.experimental.pallas import tpu as pltpu


def output_layer_kernel(x_ref, locs_ref, rot_ref, w1_ref, w2_ref, bias_ref,
                        brot_ref, sloc_ref, srot_ref, newlocs_ref, newrots_ref):
    f32 = jnp.float32
    # Monarch stage 1 and stage 2 (stage-2 columns already gathered to the
    # 3*ncols entries each group actually consumes).
    y1 = jnp.dot(x_ref[...], w1_ref[...], preferred_element_type=f32)            # (TN, G*b*p)
    mon = jnp.dot(y1, w2_ref[...], preferred_element_type=f32) + bias_ref[...]   # (TN, G*9*ncols)
    # Replicate each 3x3 rotation entry across the ncols columns it multiplies.
    rrep = jnp.dot(rot_ref[...], brot_ref[...], preferred_element_type=f32)      # (TN, G*9*ncols)
    prod = rrep * mon                                                            # rot[a,s]*mon3[s,c]
    # Constant 0/1 selection matmuls sum over s and gather the output lanes.
    newlocs_ref[...] = (jnp.dot(prod, sloc_ref[...], preferred_element_type=f32)
                        + locs_ref[...])
    newrots_ref[...] = jnp.dot(prod, srot_ref[...], preferred_element_type=f32)


def _block_diag(mat, g):
    """(g*r, g*c) block-diagonal matrix with g copies of `mat` on the diagonal."""
    r, c = mat.shape
    eye = jnp.eye(g, dtype=mat.dtype)
    return jnp.einsum("ab,ij->aibj", eye, mat).reshape(g * r, g * c)


def output_layer(data, locs, rotations, L, R, Biases, *, m, b, p, q, block_n=512):
    """Pallas version of outputLayer.forward."""
    N = data.shape[0]
    feat = math.prod(data.shape[1:])
    assert feat % (m * b) == 0
    G = feat // (m * b)
    mb, bp, pq = m * b, b * p, p * q
    assert pq % 4 == 0
    C = pq // 4
    ncols = min(5, C)          # monarch columns actually consumed per group row
    rot_cols = ncols - 2       # NewRots column count (== 3 when p*q >= 20)
    assert rot_cols >= 1, "p*q too small: need at least 3 columns per monarch row group"
    nrep = 9 * ncols           # 3 (output row a) * 3 (sum index s) * ncols

    f32 = jnp.float32
    L32, R32 = L.astype(f32), R.astype(f32)

    # ---- fold the Monarch factors into dense per-group matrices (wrapper-side) ----
    # stage 1: y1[j*p+k] = sum_i x[i*b+j] * L[j,i,k]
    ii, jj, kk = np.meshgrid(np.arange(m), np.arange(b), np.arange(p), indexing="ij")
    W1 = jnp.zeros((mb, bp), f32).at[ii * b + jj, jj * p + kk].set(L32[jj, ii, kk])
    # stage 2: y2[k*q+r] = sum_j y1[j*p+k] * R[k,j,r] + Biases[k,0,r]
    j2, k2, r2 = np.meshgrid(np.arange(b), np.arange(p), np.arange(q), indexing="ij")
    W2 = jnp.zeros((bp, pq), f32).at[j2 * p + k2, k2 * q + r2].set(R32[k2, j2, r2])
    bias_flat = Biases.reshape(pq).astype(f32)

    # ---- constant replicate / select matrices for the rotation head ----
    a_i, s_i, c_i = np.meshgrid(np.arange(3), np.arange(3), np.arange(ncols), indexing="ij")
    rep_rows = (a_i * 3 + s_i).reshape(-1)   # which rotation entry feeds each rep column
    mon_cols = (s_i * C + c_i).reshape(-1)   # which y2 column feeds each rep column
    W2m = W2[:, mon_cols]                    # (bp, nrep): stage 2 + column gather fused
    bias_m = bias_flat[mon_cols].reshape(1, nrep)

    B_rot = np.zeros((9, nrep), np.float32)
    B_rot[rep_rows, np.arange(nrep)] = 1.0

    S_loc = np.zeros((nrep, 7), np.float32)          # sums over s, gathers c<2; col 6 stays 0
    sel = c_i < 2
    S_loc[((a_i * 3 + s_i) * ncols + c_i)[sel], (2 * a_i + c_i)[sel]] = 1.0

    S_rot = np.zeros((nrep, 3 * rot_cols), np.float32)   # sums over s, gathers 2<=c<ncols
    selr = c_i >= 2
    S_rot[((a_i * 3 + s_i) * ncols + c_i)[selr], (a_i * rot_cols + (c_i - 2))[selr]] = 1.0

    # ---- expand over groups (block-diagonal) so the kernel is pure row-blocked matmul ----
    W1g = _block_diag(W1, G)                             # (G*mb, G*bp)
    W2mg = _block_diag(W2m, G)                           # (G*bp, G*nrep)
    bias_mg = jnp.tile(jnp.asarray(bias_m), (1, G))      # (1, G*nrep)
    B_rotg = _block_diag(jnp.asarray(B_rot), G)          # (G*9, G*nrep)
    S_locg = _block_diag(jnp.asarray(S_loc), G)          # (G*nrep, G*7)
    S_rotg = _block_diag(jnp.asarray(S_rot), G)          # (G*nrep, G*3*rot_cols)

    # ---- lane-dense 2-D views (all reshapes done here, outside the kernel) ----
    x2 = jnp.reshape(data.astype(f32), (N, G * mb))
    locs2 = jnp.reshape(locs.astype(f32), (N, G * 7))
    rot2 = jnp.reshape(rotations.astype(f32), (N, G * 9))

    # ---- batch blocking: TN rows per grid step ----
    TN = int(min(block_n, N))
    if TN >= N and N >= 16:
        TN = -(-N // 2)                   # keep >=2 grid steps so v7x's 2 TCs both get work
    if TN < N:
        TN = max(8, (TN // 8) * 8)        # sublane-aligned blocks when the grid has >1 step
    Np = -(-N // TN) * TN
    if Np != N:
        padr = ((0, Np - N), (0, 0))
        x2, locs2, rot2 = (jnp.pad(t, padr) for t in (x2, locs2, rot2))
    grid = (Np // TN,)

    in_specs = [
        pl.BlockSpec((TN, G * mb), lambda i: (i, 0)),
        pl.BlockSpec((TN, G * 7), lambda i: (i, 0)),
        pl.BlockSpec((TN, G * 9), lambda i: (i, 0)),
        pl.BlockSpec((G * mb, G * bp), lambda i: (0, 0)),
        pl.BlockSpec((G * bp, G * nrep), lambda i: (0, 0)),
        pl.BlockSpec((1, G * nrep), lambda i: (0, 0)),
        pl.BlockSpec((G * 9, G * nrep), lambda i: (0, 0)),
        pl.BlockSpec((G * nrep, G * 7), lambda i: (0, 0)),
        pl.BlockSpec((G * nrep, G * 3 * rot_cols), lambda i: (0, 0)),
    ]
    out_specs = (
        pl.BlockSpec((TN, G * 7), lambda i: (i, 0)),
        pl.BlockSpec((TN, G * 3 * rot_cols), lambda i: (i, 0)),
    )
    out_shape = (
        jax.ShapeDtypeStruct((Np, G * 7), f32),
        jax.ShapeDtypeStruct((Np, G * 3 * rot_cols), f32),
    )

    newlocs2, newrots2 = pl.pallas_call(
        output_layer_kernel,
        out_shape=out_shape,
        grid=grid,
        in_specs=in_specs,
        out_specs=out_specs,
        compiler_params=pltpu.CompilerParams(dimension_semantics=("parallel",)),
    )(x2, locs2, rot2, W1g, W2mg, bias_mg, B_rotg, S_locg, S_rotg)

    new_locs = newlocs2[:N].reshape(N, G, 7)
    new_rots = newrots2[:N].reshape(N, G, 3, rot_cols)
    return new_locs, new_rots


def ref_output_layer(data, locs, rotations, L, R, Biases, *, m, b, p, q):
    """Pure-JAX mirror of the PyTorch forward (correctness baseline)."""
    N = data.shape[0]
    hp = jax.lax.Precision.HIGHEST
    d = data.reshape(N, -1, m, 1, b)
    d = jnp.swapaxes(d, -3, -1)                    # (N, G, b, 1, m)
    d = jnp.matmul(d, L, precision=hp)             # (N, G, b, 1, p)
    d = jnp.swapaxes(d, -3, -1)                    # (N, G, p, 1, b)
    d = jnp.matmul(d, R, precision=hp)             # (N, G, p, 1, q)
    d = d + Biases                                 # (p, 1, q) broadcast
    d = d.reshape(N, -1, p * q)
    G = d.shape[1]
    d = d.reshape(N, G, 4, -1)
    rot_data = jnp.matmul(rotations, d[..., :-1, :], precision=hp)
    new_locs = rot_data[..., :2].reshape(*rot_data.shape[:-2], -1)
    new_rots = rot_data[..., 2:5]
    new_locs = jnp.concatenate([new_locs, 0.0 * locs[..., -1:]], axis=-1) + locs
    return new_locs, new_rots


if __name__ == "__main__":
    # m=8, b=4, p=4, q=5 -> p*q = 20, C = 5, rot_cols = 3
    m, b_, p, q = 8, 4, 4, 5
    N, G = 16, 8                      # 2 grid steps of TN=8 batch rows

    key = jax.random.PRNGKey(0)
    k1, k2, k3, k4, k5, k6 = jax.random.split(key, 6)

    # Deterministic parameter init mirroring MonarchLayer.__init__ (initfactor=1)
    L = jax.random.normal(k1, (b_, m, p), dtype=jnp.float32) / m
    R = jax.random.normal(k2, (p, b_, q), dtype=jnp.float32) / b_
    Biases = jax.random.normal(k3, (p, 1, q), dtype=jnp.float32)

    data = jax.random.normal(k4, (N, G, m * b_), dtype=jnp.float32)
    locs = jax.random.normal(k5, (N, G, 7), dtype=jnp.float32)
    rotations = jax.random.normal(k6, (N, G, 3, 3), dtype=jnp.float32)

    new_locs, new_rots = output_layer(
        data, locs, rotations, L, R, Biases, m=m, b=b_, p=p, q=q, block_n=8)
    jax.block_until_ready((new_locs, new_rots))

    ref_locs, ref_rots = ref_output_layer(
        data, locs, rotations, L, R, Biases, m=m, b=b_, p=p, q=q)
    assert new_locs.shape == ref_locs.shape and new_rots.shape == ref_rots.shape
    assert jnp.allclose(new_locs, ref_locs, atol=5e-4, rtol=5e-4), (
        float(jnp.max(jnp.abs(new_locs - ref_locs))))
    assert jnp.allclose(new_rots, ref_rots, atol=5e-4, rtol=5e-4), (
        float(jnp.max(jnp.abs(new_rots - ref_rots))))

    print("KERNEL_OK")
</pallas_src>

<mosaic_0001>
module attributes {stable_mosaic.version = 11 : i64} {
  func.func @output_layer_kernel(%arg0: i32, %arg1: memref<8x256xf32, #tpu.memory_space<vmem>>, %arg2: memref<8x56xf32, #tpu.memory_space<vmem>>, %arg3: memref<8x72xf32, #tpu.memory_space<vmem>>, %arg4: memref<256x128xf32, #tpu.memory_space<vmem>>, %arg5: memref<128x360xf32, #tpu.memory_space<vmem>>, %arg6: memref<1x360xf32, #tpu.memory_space<vmem>>, %arg7: memref<72x360xf32, #tpu.memory_space<vmem>>, %arg8: memref<360x56xf32, #tpu.memory_space<vmem>>, %arg9: memref<360x72xf32, #tpu.memory_space<vmem>>, %arg10: memref<8x56xf32, #tpu.memory_space<vmem>>, %arg11: memref<8x72xf32, #tpu.memory_space<vmem>>) attributes {dimension_semantics = [#tpu.dimension_semantics<parallel>], iteration_bounds = array<i64: 2>, scalar_prefetch = 0 : i64, scratch_operands = 0 : i64, tpu.core_type = #tpu.core_type<tc>, window_params = [{transform_indices = @transform_0, window_bounds = array<i64: 8, 256>}, {transform_indices = @transform_1, window_bounds = array<i64: 8, 56>}, {transform_indices = @transform_2, window_bounds = array<i64: 8, 72>}, {pipeline_mode = #tpu.pipeline_mode<synchronous>, transform_indices = @transform_3, window_bounds = array<i64: 256, 128>}, {pipeline_mode = #tpu.pipeline_mode<synchronous>, transform_indices = @transform_4, window_bounds = array<i64: 128, 360>}, {pipeline_mode = #tpu.pipeline_mode<synchronous>, transform_indices = @transform_5, window_bounds = array<i64: 1, 360>}, {pipeline_mode = #tpu.pipeline_mode<synchronous>, transform_indices = @transform_6, window_bounds = array<i64: 72, 360>}, {pipeline_mode = #tpu.pipeline_mode<synchronous>, transform_indices = @transform_7, window_bounds = array<i64: 360, 56>}, {pipeline_mode = #tpu.pipeline_mode<synchronous>, transform_indices = @transform_8, window_bounds = array<i64: 360, 72>}, {transform_indices = @transform_9, window_bounds = array<i64: 8, 56>}, {transform_indices = @transform_10, window_bounds = array<i64: 8, 72>}]} {
    %c0 = arith.constant 0 : index
    %c0_0 = arith.constant 0 : index
    %0 = vector.load %arg1[%c0, %c0_0] : memref<8x256xf32, #tpu.memory_space<vmem>>, vector<8x256xf32>
    %c0_1 = arith.constant 0 : index
    %c0_2 = arith.constant 0 : index
    %1 = vector.load %arg4[%c0_1, %c0_2] : memref<256x128xf32, #tpu.memory_space<vmem>>, vector<256x128xf32>
    %cst = arith.constant dense<0.000000e+00> : vector<8x128xf32>
    %2 = tpu.matmul %0, %1, %cst {dimension_numbers = #tpu.dot_dimension_numbers<[1], [0], [0], [1], [0, 0, 1, 1], [], []>} : vector<8x256xf32>, vector<256x128xf32>, vector<8x128xf32> -> vector<8x128xf32>
    %c0_3 = arith.constant 0 : index
    %c0_4 = arith.constant 0 : index
    %3 = vector.load %arg5[%c0_3, %c0_4] : memref<128x360xf32, #tpu.memory_space<vmem>>, vector<128x360xf32>
    %cst_5 = arith.constant dense<0.000000e+00> : vector<8x360xf32>
    %4 = tpu.matmul %2, %3, %cst_5 {dimension_numbers = #tpu.dot_dimension_numbers<[1], [0], [0], [1], [0, 0, 1, 1], [], []>} : vector<8x128xf32>, vector<128x360xf32>, vector<8x360xf32> -> vector<8x360xf32>
    %c0_6 = arith.constant 0 : index
    %c0_7 = arith.constant 0 : index
    %5 = vector.load %arg6[%c0_6, %c0_7] : memref<1x360xf32, #tpu.memory_space<vmem>>, vector<1x360xf32>
    %6 = vector.broadcast %5 : vector<1x360xf32> to vector<8x360xf32>
    %7 = arith.addf %4, %6 : vector<8x360xf32>
    %c0_8 = arith.constant 0 : index
    %c0_9 = arith.constant 0 : index
    %8 = vector.load %arg3[%c0_8, %c0_9] : memref<8x72xf32, #tpu.memory_space<vmem>>, vector<8x72xf32>
    %c0_10 = arith.constant 0 : index
    %c0_11 = arith.constant 0 : index
    %9 = vector.load %arg7[%c0_10, %c0_11] : memref<72x360xf32, #tpu.memory_space<vmem>>, vector<72x360xf32>
    %cst_12 = arith.constant dense<0.000000e+00> : vector<8x360xf32>
    %10 = tpu.matmul %8, %9, %cst_12 {dimension_numbers = #tpu.dot_dimension_numbers<[1], [0], [0], [1], [0, 0, 1, 1], [], []>} : vector<8x72xf32>, vector<72x360xf32>, vector<8x360xf32> -> vector<8x360xf32>
    %11 = arith.mulf %10, %7 : vector<8x360xf32>
    %c0_13 = arith.constant 0 : index
    %c0_14 = arith.constant 0 : index
    %12 = vector.load %arg8[%c0_13, %c0_14] : memref<360x56xf32, #tpu.memory_space<vmem>>, vector<360x56xf32>
    %cst_15 = arith.constant dense<0.000000e+00> : vector<8x56xf32>
    %13 = tpu.matmul %11, %12, %cst_15 {dimension_numbers = #tpu.dot_dimension_numbers<[1], [0], [0], [1], [0, 0, 1, 1], [], []>} : vector<8x360xf32>, vector<360x56xf32>, vector<8x56xf32> -> vector<8x56xf32>
    %c0_16 = arith.constant 0 : index
    %c0_17 = arith.constant 0 : index
    %14 = vector.load %arg2[%c0_16, %c0_17] : memref<8x56xf32, #tpu.memory_space<vmem>>, vector<8x56xf32>
    %15 = arith.addf %13, %14 : vector<8x56xf32>
    %c0_18 = arith.constant 0 : index
    %c0_19 = arith.constant 0 : index
    %16 = vector.load %arg10[%c0_18, %c0_19] : memref<8x56xf32, #tpu.memory_space<vmem>>, vector<8x56xf32>
    tpu.vector_store %arg10[%c0_18, %c0_19], %15 {strides = array<i32>} : memref<8x56xf32, #tpu.memory_space<vmem>>, vector<8x56xf32>,
    %c0_20 = arith.constant 0 : index
    %c0_21 = arith.constant 0 : index
    %17 = vector.load %arg9[%c0_20, %c0_21] : memref<360x72xf32, #tpu.memory_space<vmem>>, vector<360x72xf32>
    %cst_22 = arith.constant dense<0.000000e+00> : vector<8x72xf32>
    %18 = tpu.matmul %11, %17, %cst_22 {dimension_numbers = #tpu.dot_dimension_numbers<[1], [0], [0], [1], [0, 0, 1, 1], [], []>} : vector<8x360xf32>, vector<360x72xf32>, vector<8x72xf32> -> vector<8x72xf32>
    %c0_23 = arith.constant 0 : index
    %c0_24 = arith.constant 0 : index
    %19 = vector.load %arg11[%c0_23, %c0_24] : memref<8x72xf32, #tpu.memory_space<vmem>>, vector<8x72xf32>
    tpu.vector_store %arg11[%c0_23, %c0_24], %18 {strides = array<i32>} : memref<8x72xf32, #tpu.memory_space<vmem>>, vector<8x72xf32>,
    return
  }
  func.func @transform_0(%arg0: i32) -> (i32, i32) {
    %c0_i32 = arith.constant 0 : i32
    %c0_i32_0 = arith.constant 0 : i32
    return %arg0, %c0_i32 : i32, i32
  }
  func.func @transform_1(%arg0: i32) -> (i32, i32) {
    %c0_i32 = arith.constant 0 : i32
    %c0_i32_0 = arith.constant 0 : i32
    return %arg0, %c0_i32 : i32, i32
  }
  func.func @transform_2(%arg0: i32) -> (i32, i32) {
    %c0_i32 = arith.constant 0 : i32
    %c0_i32_0 = arith.constant 0 : i32
    return %arg0, %c0_i32 : i32, i32
  }
  func.func @transform_3(%arg0: i32) -> (i32, i32) {
    %c0_i32 = arith.constant 0 : i32
    %c0_i32_0 = arith.constant 0 : i32
    %c0_i32_1 = arith.constant 0 : i32
    return %c0_i32, %c0_i32_0 : i32, i32
  }
  func.func @transform_4(%arg0: i32) -> (i32, i32) {
    %c0_i32 = arith.constant 0 : i32
    %c0_i32_0 = arith.constant 0 : i32
    %c0_i32_1 = arith.constant 0 : i32
    return %c0_i32, %c0_i32_0 : i32, i32
  }
  func.func @transform_5(%arg0: i32) -> (i32, i32) {
    %c0_i32 = arith.constant 0 : i32
    %c0_i32_0 = arith.constant 0 : i32
    %c0_i32_1 = arith.constant 0 : i32
    return %c0_i32, %c0_i32_0 : i32, i32
  }
  func.func @transform_6(%arg0: i32) -> (i32, i32) {
    %c0_i32 = arith.constant 0 : i32
    %c0_i32_0 = arith.constant 0 : i32
    %c0_i32_1 = arith.constant 0 : i32
    return %c0_i32, %c0_i32_0 : i32, i32
  }
  func.func @transform_7(%arg0: i32) -> (i32, i32) {
    %c0_i32 = arith.constant 0 : i32
    %c0_i32_0 = arith.constant 0 : i32
    %c0_i32_1 = arith.constant 0 : i32
    return %c0_i32, %c0_i32_0 : i32, i32
  }
  func.func @transform_8(%arg0: i32) -> (i32, i32) {
    %c0_i32 = arith.constant 0 : i32
    %c0_i32_0 = arith.constant 0 : i32
    %c0_i32_1 = arith.constant 0 : i32
    return %c0_i32, %c0_i32_0 : i32, i32
  }
  func.func @transform_9(%arg0: i32) -> (i32, i32) {
    %c0_i32 = arith.constant 0 : i32
    %c0_i32_0 = arith.constant 0 : i32
    return %arg0, %c0_i32 : i32, i32
  }
  func.func @transform_10(%arg0: i32) -> (i32, i32) {
    %c0_i32 = arith.constant 0 : i32
    %c0_i32_0 = arith.constant 0 : i32
    return %arg0, %c0_i32 : i32, i32
  }
}

</mosaic_0001>

<bundles_post_ra>
// kernel: tpu_custom_call.1
= control target key start
LH: loop header
LB: loop body
LE: loop exit
PB: predicated region body
PF: predicated region fallthrough
CT: control target
= control target key end

     0   :  { %s2709_s0 = inlined_call_operand.vmem [shape: f32[16,256], index: 0, kind: input, shape index: {}]   ;;  %s2710_s1 = inlined_call_operand.vmem [shape: f32[16,56], index: 1, kind: input, shape index: {}]   ;;  %s2711_s2 = inlined_call_operand.vmem [shape: f32[16,72], index: 2, kind: input, shape index: {}]   ;;  %s2712_s3 = inlined_call_operand.vmem [shape: f32[256,128], index: 3, kind: input, shape index: {}]   ;;  %s2713_s4 = inlined_call_operand.vmem [shape: f32[128,360], index: 4, kind: input, shape index: {}]   ;;  %s2714_s5 = inlined_call_operand.vmem [shape: f32[1,360], index: 5, kind: input, shape index: {}]   ;;  %s2715_s6 = inlined_call_operand.vmem [shape: f32[72,360], index: 6, kind: input, shape index: {}]   ;;  %s2716_s7 = inlined_call_operand.vmem [shape: f32[360,56], index: 7, kind: input, shape index: {}]   ;;  %s2717_s8 = inlined_call_operand.vmem [shape: f32[360,72], index: 8, kind: input, shape index: {}]   ;;  %s2718_s9 = inlined_call_operand.hbm [shape: f32[16,56], index: 9, kind: output, shape index: {0}]   ;;  %s2719_s10 = inlined_call_operand.hbm [shape: f32[16,72], index: 10, kind: output, shape index: {1}]  }
   0x1   :  { %2722 = sst [smem:[#allocation9_spill]] %s2709_s0 }
   0x2   :  { %16 = vsyncpa [#allocation3], 0 }
   0x3   :  { %18 = vsyncpa [#allocation3 + $0x1], 0 }
   0x4   :  { %19 = vsyncpa [#allocation5], 0 }
   0x5   :  { %21 = vsyncpa [#allocation5 + $0x1], 0  ;;  %s1906_s13 = smov 0   ;;  %s1908_s14 = smov 0  }
   0x6   :  { %s1910_s15 = smov 0   ;;  %s1912_s16 = smov 0  }
   0x7 LB: > { %s1927_s17 = sadd.s32 4294967295, %s1845_s16   ;;  %s1414_s18 = sadd.s32 4294967294, %s1845_s16   ;;  %s1845_s16 = sphi %s1912_s16, %s2733_s16   ;;  %s1841_s15 = sphi %s1910_s15, %s2732_s15   ;;  %s1837_s14 = sphi %s1908_s14, %s2731_s14   ;;  %s1833_s13 = sphi %s1906_s13, %s2730_s13  }
   0x8   : > { %s1931_s19 = sadd.s32 1, %s1845_s16   ;;  %s238_s20 = sadd.s32 1, %s1841_s15 }
   0x9   : > { %s235_s21 = ssub.s32 %s1845_s16, %s1931_s19  ;;  %p248_p0 = scmp.ne.s32.totalorder %s1841_s15, %s1837_s14 }
   0xa   : > { %p236_p1 = scmp.eq.s32.totalorder %s235_s21, 0  ;;  %p249_p2 = scmp.eq.s32.totalorder %s1927_s17, 1 }
   0xb   : > { %p254_p3 = scmp.ne.s32.totalorder %s1837_s14, %s1833_s13  ;;  %p255_p4 = scmp.eq.s32.totalorder %s1414_s18, 1 }
   0xc   : > { %s1942_s22 = scalar_select %p236_p1, %s1841_s15, %s238_s20  }
   0xd   : > { %p1944_p5 = por %p249_p2, %p248_p0  ;;  %p1948_p6 = por %p255_p4, %p254_p3 }
   0xe   : > { %2723 = sst [smem:[#allocation8_spill]] %s1942_s22  ;;  %p1417_p7 = scmp.ge.s32.totalorder %s1845_s16, 1 }
   0xf   : > { %p339_p8 = scmp.lt.s32.totalorder %s1845_s16, 3 }
  0x11   : > { %p340_p9 = pnand %p1417_p7, %p339_p8 }
  0x12   : > { %p390_p10 = scmp.lt.s32.totalorder (!%p340_p9), %s1927_s17, 1  ;;  %s2726_s0 = sld [smem:[#allocation9_spill]] (!%p340_p9) }
  0x13   : > { %343 = sbr.rel (%p340_p9) target bundleno = 729 (0x2d9), region = 56  ;;  %s2720_s25 = sshll.u32 (!%p340_p9), %s1927_s17, 7 }
  0x14   : > { %s1849_s12 = smov (!%p340_p9), [#allocation2]  }
  0x15   : > { %s1759_s18 = sshll.u32 (!%p340_p9), %s1849_s12, 4  ;;  %s1760_s18 = int_to_ptr.vmem [resolvable:$false] %s1759_s18 }
  0x18   : > { %v436_v0 = vld [vmem:[%s2712_s3 + $0xf8] sm:$0xff]  ;;  %v435_v2 = vld [vmem:[%s2712_s3 + $0xf0] sm:$0xff]  ;;  %v1847_v4 = vmov 0.0   ;;  %v434_v5 = vld [vmem:[%s2712_s3 + $0xe8] sm:$0xff]  ;;  %s1972_s21 = scalar_select %p390_p10, %s1927_s17, 1  ;;  %vm1848_vm0 = vmmov 0  }
  0x19   : > { %v420_v1 = vld [vmem:[%s2712_s3 + $0x78] sm:$0xff]  ;;  %1435 = vmatprep.subr.mxu0 %v436_v0  ;;  %v419_v3 = vld [vmem:[%s2712_s3 + $0x70] sm:$0xff]  ;;  %636 = vmatprep.mubr.f32.mxu1 %v1847_v4  ;;  %v418_v6 = vld [vmem:[%s2712_s3 + $0x68] sm:$0xff]  ;;  %vm741_vm1 = vcmask 588800   ;;  %vm935_vm2 = vcmask 850944   ;;  %vm1079_vm3 = vcmask 457728  }
  0x1a   : > { %1436 = vmatpush3.msra.mxu0 %v420_v1  ;;  %v433_v7 = vld [vmem:[%s2712_s3 + $0xe0] sm:$0xff]  ;;  %s1434_s29 = sshll.u32 %s1972_s21, 4  ;;  %v432_v9 = vld [vmem:[%s2712_s3 + $0xd8] sm:$0xff]  ;;  %v431_v11 = vld [vmem:[%s2712_s3 + $0xd0] sm:$0xff]  ;;  %s1422_s20 = sshll.u32 %s1972_s21, 3 }
  0x1b   : > { %1437 = vmatprep.subr.mxu0 %v435_v2  ;;  %v417_v8 = vld [vmem:[%s2712_s3 + $0x60] sm:$0xff]  ;;  %v416_v10 = vld [vmem:[%s2712_s3 + $0x58] sm:$0xff]  ;;  %s1993_s27 = scalar_lea.vmem %s2726_s0, %s1434_s29  ;;  %v415_v12 = vld [vmem:[%s2712_s3 + $0x50] sm:$0xff]  ;;  %s402_s22 = scalar_lea.vmem %s2711_s2, %s1422_s20 }
  0x1c   : > { %1438 = vmatpush3.msra.mxu0 %v419_v3  ;;  %v430_v13 = vld [vmem:[%s2712_s3 + $0xc8] sm:$0xff]  ;;  %v553_v16 = vld [vmem:[%s2713_s4 + $0x170] sm:$0xff]  ;;  %v429_v18 = vld [vmem:[%s2712_s3 + $0xc0] sm:$0xff]  ;;  %s2636_s0 = sand.u32 1, %s1837_s14  }
  0x1d   : > { %1439 = vmatprep.subr.mxu0 %v434_v5  ;;  %v404_v14 = vld [vmem:[%s1993_s27 + $0x8] sm:$0xff]  ;;  %572 = vmatprep.subr.mxu1 %v553_v16  ;;  %v550_v19 = vld [vmem:[%s2713_s4 + $0x158] sm:$0xff]  ;;  %v549_v20 = vld [vmem:[%s2713_s4 + $0x150] sm:$0xff]  ;;  %s2721_s29 = sshll.u32 %s2636_s0, 3 }
  0x1e   : > { %1440 = vmatpush3.msra.mxu0 %v418_v6  ;;  %v414_v15 = vld [vmem:[%s2712_s3 + $0x48] sm:$0xff]  ;;  %501 = vmatprep.mubr.f32.mxu0 %v404_v14  ;;  %v413_v21 = vld [vmem:[%s2712_s3 + $0x40] sm:$0xff]  ;;  %v428_v23 = vld [vmem:[%s2712_s3 + $0xb8] sm:$0xff]  ;;  %s382_s26 = scalar_lea.vmem [#allocation2], %s2721_s29 }
  0x1f   : > { %1441 = vmatprep.subr.mxu0 %v433_v7  ;;  %v552_v17 = vld [vmem:[%s2713_s4 + $0x168] sm:$0xff]  ;;  %v547_v22 = vld [vmem:[%s2713_s4 + $0x140] sm:$0xff]  ;;  %v546_v24 = vld [vmem:[%s2713_s4 + $0x138] sm:$0xff]  ;;  %s1286_s28 = sshll.u32 %s382_s26, 4  ;;  %s1287_s28 = int_to_ptr.vmem [resolvable:$true] %s1286_s28 }
  0x20   : > { %1442 = vmatpush3.msra.mxu0 %v417_v8  ;;  %573 = vmatpush1.msra.mxu1 %v552_v17  ;;  %v412_v25 = vld [vmem:[%s2712_s3 + $0x38] sm:$0xff]  ;;  %v544_v26 = vld [vmem:[%s2713_s4 + $0x128] sm:$0xff]  ;;  %v427_v27 = vld [vmem:[%s2712_s3 + $0xb0] sm:$0xff]  ;;  %s1755_s11 = scalar_lea.vmem %s1287_s28, 128  ;;  %p1762_p0 = scmp.lt.s32.totalorder %s1287_s28, %s1760_s18 }
  0x21   : > { %1443 = vmatprep.subr.mxu0 %v432_v9  ;;  %574 = vmatprep.subr.mxu1 %v550_v19  ;;  %v543_v28 = vld [vmem:[%s2713_s4 + $0x120] sm:$0xff]  ;;  %v411_v29 = vld [vmem:[%s2712_s3 + $0x30] sm:$0xff]  ;;  %v426_v31 = vld [vmem:[%s2712_s3 + $0xa8] sm:$0xff]  ;;  %p1756_p11 = scmp.ne.s32.totalorder %s1287_s28, %s1755_s11 }
  0x22   : > { %1444 = vmatpush3.msra.mxu0 %v416_v10  ;;  %575 = vmatpush1.msra.mxu1 %v549_v20  ;;  %v541_v30 = vld [vmem:[%s2713_s4 + $0x110] sm:$0xff]  ;;  %v540_v32 = vld [vmem:[%s2713_s4 + $0x108] sm:$0xff]  ;;  %v538_v34 = vld [vmem:[%s2713_s4 + $0xf8] sm:$0xff] }
  0x23   : > { %1445 = vmatprep.subr.mxu0 %v431_v11  ;;  %576 = vmatprep.subr.mxu1 %v547_v22  ;;  %v410_v33 = vld [vmem:[%s2712_s3 + $0x28] sm:$0xff]  ;;  %v425_v35 = vld [vmem:[%s2712_s3 + $0xa0] sm:$0xff]  ;;  %v537_v36 = vld [vmem:[%s2713_s4 + $0xf0] sm:$0xff]  ;;  %p1757_p12 = pnand %p1756_p11, %p1944_p5 }
  0x24   : > { %1446 = vmatpush3.msra.mxu0 %v415_v12  ;;  %577 = vmatpush1.msra.mxu1 %v546_v24  ;;  %v409_v37 = vld [vmem:[%s2712_s3 + $0x20] sm:$0xff]  ;;  %v424_v39 = vld [vmem:[%s2712_s3 + $0x98] sm:$0xff]  ;;  %v532_v42 = vld [vmem:[%s2713_s4 + $0xc8] sm:$0xff] }
  0x25   : > { %1447 = vmatprep.subr.mxu0 %v430_v13  ;;  %578 = vmatprep.subr.mxu1 %v544_v26  ;;  %v535_v38 = vld [vmem:[%s2713_s4 + $0xe0] sm:$0xff]  ;;  %v534_v40 = vld [vmem:[%s2713_s4 + $0xd8] sm:$0xff]  ;;  %v423_v43 = vld [vmem:[%s2712_s3 + $0x90] sm:$0xff]  ;;  %p1758_p13 = pneg %p1757_p12 }
  0x26   : > { %1448 = vmatpush3.msra.mxu0 %v414_v15  ;;  %579 = vmatpush1.msra.mxu1 %v543_v28  ;;  %v408_v41 = vld [vmem:[%s2712_s3 + $0x18] sm:$0xff]  ;;  %v531_v44 = vld [vmem:[%s2713_s4 + $0xc0] sm:$0xff]  ;;  %v407_v45 = vld [vmem:[%s2712_s3 + $0x10] sm:$0xff] }
  0x27   : > { %1449 = vmatprep.subr.mxu0 %v429_v18  ;;  %580 = vmatprep.subr.mxu1 %v541_v30  ;;  %v529_v46 = vld [vmem:[%s2713_s4 + $0xb0] sm:$0xff]  ;;  %v422_v47 = vld [vmem:[%s2712_s3 + $0x88] sm:$0xff]  ;;  %v526_v50 = vld [vmem:[%s2713_s4 + $0x98] sm:$0xff] }
  0x28   : > { %1450 = vmatpush3.msra.mxu0 %v413_v21  ;;  %581 = vmatpush1.msra.mxu1 %v540_v32  ;;  %v528_v48 = vld [vmem:[%s2713_s4 + $0xa8] sm:$0xff]  ;;  %v421_v51 = vld [vmem:[%s2712_s3 + $0x80] sm:$0xff]  ;;  %v525_v52 = vld [vmem:[%s2713_s4 + $0x90] sm:$0xff] }
  0x29   : > { %1451 = vmatprep.subr.mxu0 %v428_v23  ;;  %582 = vmatprep.subr.mxu1 %v538_v34  ;;  %v406_v49 = vld [vmem:[%s2712_s3 + $0x8] sm:$0xff]  ;;  %v405_v53 = vld [vmem:[%s2712_s3] sm:$0xff]  ;;  %v554_v56 = vld [vmem:[%s2713_s4 + $0x178] sm:$0xff] }
  0x2a   : > { %1452 = vmatpush3.msra.mxu0 %v412_v25  ;;  %583 = vmatpush1.msra.mxu1 %v537_v36  ;;  %v523_v54 = vld [vmem:[%s2713_s4 + $0x80] sm:$0xff]  ;;  %v522_v57 = vld [vmem:[%s2713_s4 + $0x78] sm:$0xff]  ;;  %v520_v58 = vld [vmem:[%s2713_s4 + $0x68] sm:$0xff] }
  0x2b   : > { %1453 = vmatprep.subr.mxu0 %v427_v27  ;;  %584 = vmatprep.subr.mxu1 %v535_v38  ;;  %v403_v55 = vld [vmem:[%s1993_s27] sm:$0xff]  ;;  %v517_v61 = vld [vmem:[%s2713_s4 + $0x50] sm:$0xff]  ;;  %v548_v62 = vld [vmem:[%s2713_s4 + $0x148] sm:$0xff]  ;;  %s2652_s27 = scalar_lea.hbm %s2718_s9, %s2720_s25 }
  0x2c   : > { %1454 = vmatpush3.msra.mxu0 %v411_v29  ;;  %585 = vmatpush1.msra.mxu1 %v534_v40  ;;  %v551_v59 = vld [vmem:[%s2713_s4 + $0x160] sm:$0xff]  ;;  %v516_v63 = vld [vmem:[%s2713_s4 + $0x48] sm:$0xff]  ;;  %v514_v0 = vld [vmem:[%s2713_s4 + $0x38] sm:$0xff] }
  0x2d   : > { %1455 = vmatprep.subr.mxu0 %v426_v31  ;;  %586 = vmatprep.subr.mxu1 %v532_v42  ;;  %v519_v60 = vld [vmem:[%s2713_s4 + $0x60] sm:$0xff]  ;;  %v545_v1 = vld [vmem:[%s2713_s4 + $0x130] sm:$0xff]  ;;  %v542_v3 = vld [vmem:[%s2713_s4 + $0x118] sm:$0xff] }
  0x2e   : > { %1456 = vmatpush3.msra.mxu0 %v410_v33  ;;  %587 = vmatpush1.msra.mxu1 %v531_v44  ;;  %v513_v2 = vld [vmem:[%s2713_s4 + $0x30] sm:$0xff]  ;;  %v539_v5 = vld [vmem:[%s2713_s4 + $0x100] sm:$0xff]  ;;  %v536_v6 = vld [vmem:[%s2713_s4 + $0xe8] sm:$0xff] }
  0x2f   : > { %1457 = vmatprep.subr.mxu0 %v425_v35  ;;  %588 = vmatprep.subr.mxu1 %v529_v46  ;;  %v533_v7 = vld [vmem:[%s2713_s4 + $0xd0] sm:$0xff]  ;;  %v530_v8 = vld [vmem:[%s2713_s4 + $0xb8] sm:$0xff]  ;;  %v527_v9 = vld [vmem:[%s2713_s4 + $0xa0] sm:$0xff] }
  0x30   : > { %1458 = vmatpush3.msra.mxu0 %v409_v37  ;;  %589 = vmatpush1.msra.mxu1 %v528_v48  ;;  %v524_v10 = vld [vmem:[%s2713_s4 + $0x88] sm:$0xff]  ;;  %v521_v11 = vld [vmem:[%s2713_s4 + $0x70] sm:$0xff]  ;;  %v518_v12 = vld [vmem:[%s2713_s4 + $0x58] sm:$0xff] }
  0x31   : > { %1459 = vmatprep.subr.mxu0 %v424_v39  ;;  %590 = vmatprep.subr.mxu1 %v526_v50  ;;  %v511_v13 = vld [vmem:[%s2713_s4 + $0x20] sm:$0xff]  ;;  %v510_v15 = vld [vmem:[%s2713_s4 + $0x18] sm:$0xff]  ;;  %v508_v16 = vld [vmem:[%s2713_s4 + $0x8] sm:$0xff] }
  0x32   : > { %1460 = vmatpush3.msra.mxu0 %v408_v41  ;;  %591 = vmatpush1.msra.mxu1 %v525_v52  ;;  %v515_v14 = vld [vmem:[%s2713_s4 + $0x40] sm:$0xff]  ;;  %v512_v17 = vld [vmem:[%s2713_s4 + $0x28] sm:$0xff]  ;;  %v509_v19 = vld [vmem:[%s2713_s4 + $0x10] sm:$0xff] }
  0x33   : > { %1461 = vmatprep.subr.mxu0 %v423_v43  ;;  %592 = vmatprep.subr.mxu1 %v523_v54  ;;  %v507_v18 = vld [vmem:[%s2713_s4] sm:$0xff]  ;;  %v739_v20 = vld [vmem:[%s2715_s6 + $0xc8] sm:$0xff]  ;;  %v920_v21 = vld [vmem:[%s2716_s7 + $0xf8] sm:$0xff] }
  0x34   : > { %1462 = vmatpush3.msra.mxu0 %v407_v45  ;;  %593 = vmatpush1.msra.mxu1 %v522_v57  ;;  %v738_v25 = vld [vmem:[%s2715_s6 + $0xc0] sm:$0xff]  ;;  %v736_v26 = vld [vmem:[%s2715_s6 + $0xb0] sm:$0xff]  ;;  %v904_v27 = vld [vmem:[%s2716_s7 + $0x78] sm:$0xff] }
  0x35   : > { %1463 = vmatprep.subr.mxu0 %v422_v47  ;;  %594 = vmatprep.subr.mxu1 %v520_v58  ;;  %v735_v28 = vld [vmem:[%s2715_s6 + $0xa8] sm:$0xff]  ;;  %v919_v29 = vld [vmem:[%s2716_s7 + $0xf0] sm:$0xff]  ;;  %v733_v30 = vld [vmem:[%s2715_s6 + $0x98] sm:$0xff] }
  0x36   : > { %1464 = vmatpush3.msra.mxu0 %v406_v49  ;;  %595 = vmatpush1.msra.mxu1 %v519_v60  ;;  %v903_v31 = vld [vmem:[%s2716_s7 + $0x70] sm:$0xff]  ;;  %v918_v33 = vld [vmem:[%s2716_s7 + $0xe8] sm:$0xff]  ;;  %v730_v34 = vld [vmem:[%s2715_s6 + $0x80] sm:$0xff] }
  0x37   : > { %1465 = vmatprep.subr.mxu0 %v421_v51  ;;  %596 = vmatprep.subr.mxu1 %v517_v61  ;;  %v732_v32 = vld [vmem:[%s2715_s6 + $0x90] sm:$0xff]  ;;  %v902_v35 = vld [vmem:[%s2716_s7 + $0x68] sm:$0xff]  ;;  %v729_v36 = vld [vmem:[%s2715_s6 + $0x78] sm:$0xff] }
  0x38   : > { %1466 = vmatpush3.msra.mxu0 %v405_v53  ;;  %597 = vmatpush1.msra.mxu1 %v516_v63  ;;  %v917_v37 = vld [vmem:[%s2716_s7 + $0xe0] sm:$0xff]  ;;  %v727_v38 = vld [vmem:[%s2715_s6 + $0x68] sm:$0xff]  ;;  %v916_v41 = vld [vmem:[%s2716_s7 + $0xd8] sm:$0xff] }
  0x39   : > { %502 = vmatmul.mubr.f32.vlgmr.msra.gmra.mxu0 %v403_v55  ;;  %1595 = vmatprep.subr.mxu0 %v1847_v4  ;;  %v901_v39 = vld [vmem:[%s2716_s7 + $0x60] sm:$0xff]  ;;  %v724_v42 = vld [vmem:[%s2715_s6 + $0x50] sm:$0xff]  ;;  %v900_v43 = vld [vmem:[%s2716_s7 + $0x58] sm:$0xff] }
  0x3a   : > { %1596 = vmatpush3.msra.mxu0 %v554_v56  ;;  %598 = vmatprep.subr.mxu1 %v514_v0  ;;  %v726_v40 = vld [vmem:[%s2715_s6 + $0x60] sm:$0xff]  ;;  %v723_v44 = vld [vmem:[%s2715_s6 + $0x48] sm:$0xff]  ;;  %v721_v45 = vld [vmem:[%s2715_s6 + $0x38] sm:$0xff] }
  0x3b   : > { %1597 = vmatprep.subr.mxu0 %v1847_v4  ;;  %599 = vmatpush1.msra.mxu1 %v513_v2  ;;  %v720_v46 = vld [vmem:[%s2715_s6 + $0x30] sm:$0xff]  ;;  %v718_v47 = vld [vmem:[%s2715_s6 + $0x20] sm:$0xff]  ;;  %v717_v48 = vld [vmem:[%s2715_s6 + $0x18] sm:$0xff] }
  0x3c   : > { %1598 = vmatpush3.msra.mxu0 %v551_v59  ;;  %600 = vmatprep.subr.mxu1 %v511_v13  ;;  %v715_v49 = vld [vmem:[%s2715_s6 + $0x8] sm:$0xff]  ;;  %v714_v50 = vld [vmem:[%s2715_s6] sm:$0xff]  ;;  %v740_v52 = vld [vmem:[%s2715_s6 + $0xd0] sm:$0xff] }
  0x3d   : > { %1599 = vmatprep.subr.mxu0 %v1847_v4  ;;  %601 = vmatpush1.msra.mxu1 %v510_v15  ;;  %v713_v51 = vld [vmem:[%s402_s22] sm:$0xff]  ;;  %v737_v53 = vld [vmem:[%s2715_s6 + $0xb8] sm:$0xff]  ;;  %v731_v55 = vld [vmem:[%s2715_s6 + $0x88] sm:$0xff]  ;;  %s398_s22 = scalar_lea.vmem %s2710_s1, %s1422_s20  ;;  %s1268_s20 = scalar_lea.sflag [#allocation3], %s2636_s0 }
  0x3e   : > { %1600 = vmatpush3.msra.mxu0 %v548_v62  ;;  %602 = vmatprep.subr.mxu1 %v508_v16  ;;  %v734_v54 = vld [vmem:[%s2715_s6 + $0xa0] sm:$0xff]  ;;  %v728_v56 = vld [vmem:[%s2715_s6 + $0x70] sm:$0xff]  ;;  %v725_v57 = vld [vmem:[%s2715_s6 + $0x58] sm:$0xff] }
  0x3f   : > { %1601 = vmatprep.subr.mxu0 %v1847_v4  ;;  %603 = vmatpush1.msra.mxu1 %v507_v18  ;;  %v722_v58 = vld [vmem:[%s2715_s6 + $0x40] sm:$0xff]  ;;  %v719_v59 = vld [vmem:[%s2715_s6 + $0x28] sm:$0xff]  ;;  %v716_v60 = vld [vmem:[%s2715_s6 + $0x10] sm:$0xff] }
  0x40   : > { %1602 = vmatpush3.msra.mxu0 %v545_v1  ;;  %1627 = vmatprep.mubr.msk.f32.mxu0 %vm1848_vm0, %v1847_v4  ;;  %v915_v61 = vld [vmem:[%s2716_s7 + $0xd0] sm:$0xff]  ;;  %v914_v63 = vld [vmem:[%s2716_s7 + $0xc8] sm:$0xff]  ;;  %v913_v1 = vld [vmem:[%s2716_s7 + $0xc0] sm:$0xff] }
  0x41   : > { %1603 = vmatprep.subr.mxu0 %v1847_v4  ;;  %759 = vmatprep.subr.mxu1 %v739_v20  ;;  %v899_v62 = vld [vmem:[%s2716_s7 + $0x50] sm:$0xff]  ;;  %v898_v0 = vld [vmem:[%s2716_s7 + $0x48] sm:$0xff]  ;;  %v897_v2 = vld [vmem:[%s2716_s7 + $0x40] sm:$0xff] }
  0x42   : > { %1604 = vmatpush3.msra.mxu0 %v542_v3  ;;  %v912_v3 = vld [vmem:[%s2716_s7 + $0xb8] sm:$0xff]  ;;  %v909_v13 = vld [vmem:[%s2716_s7 + $0xa0] sm:$0xff]  ;;  %v891_v18 = vld [vmem:[%s2716_s7 + $0x10] sm:$0xff] }
  0x43   : > { %1605 = vmatprep.subr.mxu0 %v1847_v4  ;;  %v908_v15 = vld [vmem:[%s2716_s7 + $0x98] sm:$0xff]  ;;  %v930_v20 = vld [vmem:[%s2716_s7 + $0x148] sm:$0xff] }
  0x44   : > { %1606 = vmatpush3.msra.mxu0 %v539_v5  ;;  %v896_v5 = vld [vmem:[%s2716_s7 + $0x38] sm:$0xff] }
  0x45   : > { %1607 = vmatprep.subr.mxu0 %v1847_v4  ;;  %v892_v16 = vld [vmem:[%s2716_s7 + $0x18] sm:$0xff] }
  0x46   : > { %1608 = vmatpush3.msra.mxu0 %v536_v6  ;;  %v911_v6 = vld [vmem:[%s2716_s7 + $0xb0] sm:$0xff] }
  0x47   : > { %1609 = vmatprep.subr.mxu0 %v1847_v4 }
  0x48   : > { %1610 = vmatpush3.msra.mxu0 %v533_v7  ;;  %v933_v7 = vld [vmem:[%s2716_s7 + $0x160] sm:$0xff] }
  0x49   : > { %1611 = vmatprep.subr.mxu0 %v1847_v4 }
  0x4a   : > { %1612 = vmatpush3.msra.mxu0 %v530_v8  ;;  %v895_v8 = vld [vmem:[%s2716_s7 + $0x30] sm:$0xff] }
  0x4b   : > { %1613 = vmatprep.subr.mxu0 %v1847_v4 }
  0x4c   : > { %1614 = vmatpush3.msra.mxu0 %v527_v9  ;;  %v932_v9 = vld [vmem:[%s2716_s7 + $0x158] sm:$0xff] }
  0x4d   : > { %1615 = vmatprep.subr.mxu0 %v1847_v4 }
  0x4e   : > { %1616 = vmatpush3.msra.mxu0 %v524_v10  ;;  %v910_v10 = vld [vmem:[%s2716_s7 + $0xa8] sm:$0xff] }
  0x4f   : > { %1617 = vmatprep.subr.mxu0 %v1847_v4 }
  0x50   : > { %1618 = vmatpush3.msra.mxu0 %v521_v11  ;;  %v931_v11 = vld [vmem:[%s2716_s7 + $0x150] sm:$0xff] }
  0x51   : > { %1619 = vmatprep.subr.mxu0 %v1847_v4 }
  0x52   : > { %1620 = vmatpush3.msra.mxu0 %v518_v12  ;;  %v894_v12 = vld [vmem:[%s2716_s7 + $0x28] sm:$0xff] }
  0x53   : > { %1621 = vmatprep.subr.mxu0 %v1847_v4 }
  0x54   : > { %1622 = vmatpush3.msra.mxu0 %v515_v14  ;;  %v893_v14 = vld [vmem:[%s2716_s7 + $0x20] sm:$0xff] }
  0x55   : > { %1623 = vmatprep.subr.mxu0 %v1847_v4 }
  0x56   : > { %1624 = vmatpush3.msra.mxu0 %v512_v17  ;;  %v907_v17 = vld [vmem:[%s2716_s7 + $0x90] sm:$0xff] }
  0x57   : > { %1625 = vmatprep.subr.mxu0 %v1847_v4 }
  0x58   : > { %1626 = vmatpush3.msra.mxu0 %v509_v19  ;;  %v906_v19 = vld [vmem:[%s2716_s7 + $0x88] sm:$0xff] }
  0x59   : > { %1497 = vmatprep.subr.mxu0 %v920_v21  ;;  %v890_v21 = vld [vmem:[%s2716_s7 + $0x8] sm:$0xff] }
  0xf9   : > { %v1467_v22 = vpop.f32.mrf.mxu0 }
  0xfb   : > { %v1468_v23 = vpop.f32.mrf.mxu0 }
  0xfc   : > { %v1469_v24 = vadd.f32 %v1468_v23, %v1467_v22  ;;  %v905_v22 = vld [vmem:[%s2716_s7 + $0x80] sm:$0xff] }
  0xfd   : > { %v929_v23 = vld [vmem:[%s2716_s7 + $0x140] sm:$0xff] }
  0xfe   : > { %637 = vmatmul.mubr.f32.vlgmr.msra.gmra.mxu1 %v1469_v24  ;;  %1628 = vmatmul.mubr.f32.vlgmr.msra.gmra.mxu0 %v1469_v24  ;;  %v889_v24 = vld [vmem:[%s2716_s7] sm:$0xff] }
  0xff   : > { %760 = vmatpush1.msra.mxu1 %v738_v25  ;;  %809 = vmatprep.mubr.f32.mxu1 %v1847_v4  ;;  %v928_v25 = vld [vmem:[%s2716_s7 + $0x138] sm:$0xff] }
 0x100   : > { %761 = vmatprep.subr.mxu1 %v736_v26  ;;  %1498 = vmatpush3.msra.mxu0 %v904_v27  ;;  %v927_v26 = vld [vmem:[%s2716_s7 + $0x130] sm:$0xff]  ;;  %v926_v27 = vld [vmem:[%s2716_s7 + $0x128] sm:$0xff] }
 0x101   : > { %762 = vmatpush1.msra.mxu1 %v735_v28  ;;  %1499 = vmatprep.subr.mxu0 %v919_v29  ;;  %v925_v28 = vld [vmem:[%s2716_s7 + $0x120] sm:$0xff]  ;;  %v924_v29 = vld [vmem:[%s2716_s7 + $0x118] sm:$0xff] }
 0x102   : > { %763 = vmatprep.subr.mxu1 %v733_v30  ;;  %1500 = vmatpush3.msra.mxu0 %v903_v31  ;;  %v923_v30 = vld [vmem:[%s2716_s7 + $0x110] sm:$0xff]  ;;  %v922_v31 = vld [vmem:[%s2716_s7 + $0x108] sm:$0xff] }
 0x103   : > { %764 = vmatpush1.msra.mxu1 %v732_v32  ;;  %1501 = vmatprep.subr.mxu0 %v918_v33  ;;  %v921_v32 = vld [vmem:[%s2716_s7 + $0x100] sm:$0xff]  ;;  %v1112_v33 = vld [vmem:[%s2717_s8 + $0xf8] sm:$0xff] }
 0x104   : > { %765 = vmatprep.subr.mxu1 %v730_v34  ;;  %1502 = vmatpush3.msra.mxu0 %v902_v35 }
 0x105   : > { %766 = vmatpush1.msra.mxu1 %v729_v36  ;;  %1503 = vmatprep.subr.mxu0 %v917_v37  ;;  %v557_v36 = vlaneseq }
 0x106   : > { %767 = vmatprep.subr.mxu1 %v727_v38  ;;  %1504 = vmatpush3.msra.mxu0 %v901_v39 }
 0x107   : > { %768 = vmatpush1.msra.mxu1 %v726_v40  ;;  %1505 = vmatprep.subr.mxu0 %v916_v41  ;;  %v558_v37 = vshrl.u32 %v557_v36, 7  ;;  %v555_v41 = vld [vmem:[%s2714_s5] sm:$0x7] }
 0x108   : > { %769 = vmatprep.subr.mxu1 %v724_v42  ;;  %1506 = vmatpush3.msra.mxu0 %v900_v43  ;;  %v1081_v36 = vld [vmem:[%s2717_s8] sm:$0xff] }
 0x109   : > { %770 = vmatpush1.msra.mxu1 %v723_v44  ;;  %1507 = vmatprep.subr.mxu0 %v915_v61  ;;  %v563_v38 = vsub.s32 1, %v558_v37  ;;  %v559_v39 = vsub.s32 0, %v558_v37 }
 0x10a   : > { %771 = vmatprep.subr.mxu1 %v721_v45  ;;  %1508 = vmatpush3.msra.mxu0 %v899_v62  ;;  %v1118_v62 = vld [vmem:[%s2717_s8 + $0x128] sm:$0xff] }
 0x10b   : > { %772 = vmatpush1.msra.mxu1 %v720_v46  ;;  %1509 = vmatprep.subr.mxu0 %v914_v63  ;;  %v564_v42 = vrot.slane %v555_v41, %v563_v38  ;;  %v560_v43 = vrot.slane %v555_v41, %v559_v39 }
 0x10c   : > { %773 = vmatprep.subr.mxu1 %v718_v47  ;;  %1510 = vmatpush3.msra.mxu0 %v898_v0  ;;  %v1096_v0 = vld [vmem:[%s2717_s8 + $0x78] sm:$0xff] }
 0x10d   : > { %774 = vmatpush1.msra.mxu1 %v717_v48  ;;  %1511 = vmatprep.subr.mxu0 %v913_v1 }
 0x10e   : > { %775 = vmatprep.subr.mxu1 %v715_v49  ;;  %1512 = vmatpush3.msra.mxu0 %v897_v2  ;;  %v1111_v2 = vld [vmem:[%s2717_s8 + $0xf0] sm:$0xff] }
 0x10f   : > { %776 = vmatpush1.msra.mxu1 %v714_v50  ;;  %1513 = vmatprep.subr.mxu0 %v912_v3  ;;  %v1117_v3 = vld [vmem:[%s2717_s8 + $0x120] sm:$0xff] }
 0x110   : > { %1424 = vmatmul.mubr.msk.f32.vlgmr.msra.gmra.mxu1 %vm741_vm1, %v713_v51  ;;  %1630 = vmatprep.subr.mxu1 %v1847_v4 }
 0x111   : > { %1631 = vmatpush3.msra.mxu1 %v740_v52  ;;  %1648 = vmatprep.mubr.msk.f32.mxu1 %vm1848_vm0, %v1847_v4  ;;  %v1124_v52 = vld [vmem:[%s2717_s8 + $0x158] sm:$0xff] }
 0x112   : > { %1632 = vmatprep.subr.mxu1 %v1847_v4  ;;  %1514 = vmatpush3.msra.mxu0 %v896_v5  ;;  %v1095_v5 = vld [vmem:[%s2717_s8 + $0x70] sm:$0xff] }
 0x113   : > { %1633 = vmatpush3.msra.mxu1 %v737_v53  ;;  %1515 = vmatprep.subr.mxu0 %v911_v6  ;;  %v1123_v53 = vld [vmem:[%s2717_s8 + $0x150] sm:$0xff]  ;;  %v1110_v6 = vld [vmem:[%s2717_s8 + $0xe8] sm:$0xff] }
 0x114   : > { %1634 = vmatprep.subr.mxu1 %v1847_v4  ;;  %1516 = vmatpush3.msra.mxu0 %v895_v8  ;;  %v1094_v8 = vld [vmem:[%s2717_s8 + $0x68] sm:$0xff] }
 0x115   : > { %1635 = vmatpush3.msra.mxu1 %v734_v54  ;;  %1517 = vmatprep.subr.mxu0 %v910_v10  ;;  %v567_v54 = vsub.s32 2, %v558_v37  ;;  %v1115_v10 = vld [vmem:[%s2717_s8 + $0x110] sm:$0xff] }
 0x116   : > { %1636 = vmatprep.subr.mxu1 %v1847_v4  ;;  %1518 = vmatpush3.msra.mxu0 %v894_v12  ;;  %v1108_v12 = vld [vmem:[%s2717_s8 + $0xd8] sm:$0xff] }
 0x117   : > { %1637 = vmatpush3.msra.mxu1 %v731_v55  ;;  %1519 = vmatprep.subr.mxu0 %v909_v13  ;;  %v1122_v55 = vld [vmem:[%s2717_s8 + $0x148] sm:$0xff] }
 0x118   : > { %1638 = vmatprep.subr.mxu1 %v1847_v4  ;;  %1520 = vmatpush3.msra.mxu0 %v893_v14  ;;  %v1114_v13 = vld [vmem:[%s2717_s8 + $0x108] sm:$0xff]  ;;  %v1092_v14 = vld [vmem:[%s2717_s8 + $0x58] sm:$0xff] }
 0x119   : > { %1639 = vmatpush3.msra.mxu1 %v728_v56  ;;  %1521 = vmatprep.subr.mxu0 %v908_v15  ;;  %v1121_v56 = vld [vmem:[%s2717_s8 + $0x140] sm:$0xff]  ;;  %v1107_v15 = vld [vmem:[%s2717_s8 + $0xd0] sm:$0xff] }
 0x11a   : > { %1640 = vmatprep.subr.mxu1 %v1847_v4  ;;  %1522 = vmatpush3.msra.mxu0 %v892_v16  ;;  %v1113_v16 = vld [vmem:[%s2717_s8 + $0x100] sm:$0xff] }
 0x11b   : > { %1641 = vmatpush3.msra.mxu1 %v725_v57  ;;  %1523 = vmatprep.subr.mxu0 %v907_v17  ;;  %v568_v57 = vrot.slane %v555_v41, %v567_v54  ;;  %v1091_v17 = vld [vmem:[%s2717_s8 + $0x50] sm:$0xff] }
 0x11c   : > { %1642 = vmatprep.subr.mxu1 %v1847_v4  ;;  %1524 = vmatpush3.msra.mxu0 %v891_v18  ;;  %v1106_v18 = vld [vmem:[%s2717_s8 + $0xc8] sm:$0xff] }
 0x11d   : > { %1643 = vmatpush3.msra.mxu1 %v722_v58  ;;  %1525 = vmatprep.subr.mxu0 %v906_v19  ;;  %v1120_v58 = vld [vmem:[%s2717_s8 + $0x138] sm:$0xff]  ;;  %v1090_v19 = vld [vmem:[%s2717_s8 + $0x48] sm:$0xff] }
 0x11e   : > { %1644 = vmatprep.subr.mxu1 %v1847_v4  ;;  %1526 = vmatpush3.msra.mxu0 %v890_v21  ;;  %v1089_v21 = vld [vmem:[%s2717_s8 + $0x40] sm:$0xff] }
 0x11f   : > { %1645 = vmatpush3.msra.mxu1 %v719_v59  ;;  %1527 = vmatprep.subr.mxu0 %v905_v22  ;;  %v1119_v59 = vld [vmem:[%s2717_s8 + $0x130] sm:$0xff]  ;;  %v1088_v22 = vld [vmem:[%s2717_s8 + $0x38] sm:$0xff] }
 0x120   : > { %1646 = vmatprep.subr.mxu1 %v1847_v4  ;;  %1528 = vmatpush3.msra.mxu0 %v889_v24  ;;  %v1087_v24 = vld [vmem:[%s2717_s8 + $0x30] sm:$0xff] }
 0x121   : > { %1647 = vmatpush3.msra.mxu1 %v716_v60  ;;  %1680 = vmatprep.subr.mxu0 %v1847_v4 }
 0x122   : > { %1649 = vmatmul.mubr.msk.f32.vlgmr.msra.gmra.mxu1 %vm741_vm1, %v713_v51  ;;  %1651 = vmatprep.subr.mxu1 %v1847_v4  ;;  %v1125_v51 = vld [vmem:[%s2717_s8 + $0x160] sm:$0xff] }
 0x123   : > { %1677 = vmatprep.mubr.msk.f32.mxu1 %vm1848_vm0, %v1847_v4  ;;  %1652 = vmatpush3.msra.mxu1 %v933_v7  ;;  %v1116_v7 = vld [vmem:[%s2717_s8 + $0x118] sm:$0xff] }
 0x124   : > { %1653 = vmatprep.subr.mxu1 %v1847_v4 }
 0x125   : > { %1654 = vmatpush3.msra.mxu1 %v932_v9  ;;  %v1109_v9 = vld [vmem:[%s2717_s8 + $0xe0] sm:$0xff] }
 0x126   : > { %1655 = vmatprep.subr.mxu1 %v1847_v4 }
 0x127   : > { %1656 = vmatpush3.msra.mxu1 %v931_v11  ;;  %v1093_v11 = vld [vmem:[%s2717_s8 + $0x60] sm:$0xff] }
 0x128   : > { %1657 = vmatprep.subr.mxu1 %v1847_v4 }
 0x129   : > { %1658 = vmatpush3.msra.mxu1 %v930_v20  ;;  %v1105_v20 = vld [vmem:[%s2717_s8 + $0xc0] sm:$0xff] }
 0x12a   : > { %1659 = vmatprep.subr.mxu1 %v1847_v4 }
 0x12b   : > { %1660 = vmatpush3.msra.mxu1 %v929_v23  ;;  %v1103_v23 = vld [vmem:[%s2717_s8 + $0xb0] sm:$0xff] }
 0x12c   : > { %1661 = vmatprep.subr.mxu1 %v1847_v4 }
 0x12d   : > { %1662 = vmatpush3.msra.mxu1 %v928_v25  ;;  %v1102_v25 = vld [vmem:[%s2717_s8 + $0xa8] sm:$0xff] }
 0x12e   : > { %1663 = vmatprep.subr.mxu1 %v1847_v4 }
 0x12f   : > { %1664 = vmatpush3.msra.mxu1 %v927_v26  ;;  %v1086_v26 = vld [vmem:[%s2717_s8 + $0x28] sm:$0xff] }
 0x130   : > { %1665 = vmatprep.subr.mxu1 %v1847_v4 }
 0x131   : > { %1666 = vmatpush3.msra.mxu1 %v926_v27  ;;  %v1101_v27 = vld [vmem:[%s2717_s8 + $0xa0] sm:$0xff] }
 0x132   : > { %1667 = vmatprep.subr.mxu1 %v1847_v4 }
 0x133   : > { %1668 = vmatpush3.msra.mxu1 %v925_v28  ;;  %v1085_v28 = vld [vmem:[%s2717_s8 + $0x20] sm:$0xff] }
 0x134   : > { %1669 = vmatprep.subr.mxu1 %v1847_v4 }
 0x135   : > { %1670 = vmatpush3.msra.mxu1 %v924_v29  ;;  %v1100_v29 = vld [vmem:[%s2717_s8 + $0x98] sm:$0xff] }
 0x136   : > { %1671 = vmatprep.subr.mxu1 %v1847_v4 }
 0x137   : > { %1672 = vmatpush3.msra.mxu1 %v923_v30  ;;  %v1084_v30 = vld [vmem:[%s2717_s8 + $0x18] sm:$0xff] }
 0x138   : > { %1673 = vmatprep.subr.mxu1 %v1847_v4 }
 0x139   : > { %1674 = vmatpush3.msra.mxu1 %v922_v31  ;;  %v1099_v31 = vld [vmem:[%s2717_s8 + $0x90] sm:$0xff] }
 0x13a   : > { %1675 = vmatprep.subr.mxu1 %v1847_v4 }
 0x13b   : > { %1676 = vmatpush3.msra.mxu1 %v921_v32  ;;  %v1083_v32 = vld [vmem:[%s2717_s8 + $0x10] sm:$0xff] }
 0x13c   : > { %1546 = vmatprep.subr.mxu1 %v1112_v33  ;;  %v1098_v33 = vld [vmem:[%s2717_s8 + $0x88] sm:$0xff] }
 0x1be   : > { %v709_v34 = vpop.f32.mrf.mxu0  ;;  %v638_v40 = vpop.f32.mrf.mxu1 }
 0x1bf   : > { %v639_v47 = vadd.f32 %v638_v40, %v560_v43  ;;  %v710_v60 = vadd.f32 %v709_v34, %v568_v57  ;;  %v1082_v34 = vld [vmem:[%s2717_s8 + $0x8] sm:$0xff]  ;;  %v934_v40 = vld [vmem:[%s398_s22] sm:$0xff]  ;;  %s1761_s22 = scalar_lea.vmem %s1760_s18, 256 }
 0x1c0   : > { %v1629_v35 = vpop.f32.mrf.mxu0  ;;  %v640_v44 = vpop.f32.mrf.mxu1  ;;  %p1763_p1 = scmp.lt.s32.totalorder %s1761_s22, %s1755_s11 }
 0x1c1   : > { %v641_v46 = vadd.f32 %v640_v44, %v564_v42  ;;  %v1097_v35 = vld [vmem:[%s2717_s8 + $0x80] sm:$0xff] }
 0x1c2   : > { %p1764_p2 = por %p1763_p1, %p1762_p0 }
 0x1c4   : > { %p1765_p3 = pnand %p1764_p2, %p1758_p13 }
 0x1d0   : > { %v811_v45 = vpop.f32.mrf.mxu1 }
 0x1d1   : > { %v2483_v50 = vmul.f32 %v811_v45, %v639_v47 }
 0x1d2   : > { %v813_v48 = vpop.f32.mrf.mxu1 }
 0x1d3   : > { %v887_v49 = vmul.f32 %v813_v48, %v641_v46 }
 0x1d5   : > { %1003 = vmatprep.mubr.f32.mxu0 %v887_v49 }
 0x1d6   : > { %1004 = vmatmul.mubr.f32.vlgmr.msra.gmra.mxu0 %v2483_v50 }
 0x1d7   : > { %1681 = vmatpush3.msra.mxu0 %v1125_v51  ;;  %1706 = vmatprep.mubr.msk.f32.mxu0 %vm1848_vm0, %v1847_v4 }
 0x1d8   : > { %1682 = vmatprep.subr.mxu0 %v1847_v4 }
 0x1d9   : > { %1683 = vmatpush3.msra.mxu0 %v1124_v52 }
 0x1da   : > { %1684 = vmatprep.subr.mxu0 %v1847_v4 }
 0x1db   : > { %1685 = vmatpush3.msra.mxu0 %v1123_v53 }
 0x1dc   : > { %1686 = vmatprep.subr.mxu0 %v1847_v4 }
 0x1dd   : > { %1687 = vmatpush3.msra.mxu0 %v1122_v55 }
 0x1de   : > { %1688 = vmatprep.subr.mxu0 %v1847_v4 }
 0x1df   : > { %1689 = vmatpush3.msra.mxu0 %v1121_v56 }
 0x1e0   : > { %1690 = vmatprep.subr.mxu0 %v1847_v4 }
 0x1e1   : > { %1691 = vmatpush3.msra.mxu0 %v1120_v58 }
 0x1e2   : > { %1692 = vmatprep.subr.mxu0 %v1847_v4  ;;  %v882_v61 = vpop.f32.mrf.mxu1 }
 0x1e3   : > { %v888_v63 = vmul.f32 %v882_v61, %v710_v60  ;;  %1693 = vmatpush3.msra.mxu0 %v1119_v59 }
 0x1e4   : > { %1694 = vmatprep.subr.mxu0 %v1847_v4  ;;  %v1650_v1 = vpop.f32.mrf.mxu1 }
 0x1e5   : > { %1695 = vmatpush3.msra.mxu0 %v1118_v62  ;;  %1678 = vmatmul.mubr.msk.f32.vlgmr.msra.gmra.mxu1 %vm935_vm2, %v888_v63 }
 0x1e6   : > { %1547 = vmatpush3.msra.mxu1 %v1096_v0  ;;  %1696 = vmatprep.subr.mxu0 %v1847_v4 }
 0x1e7   : > { %1548 = vmatprep.subr.mxu1 %v1111_v2  ;;  %1190 = vmatprep.mubr.f32.mxu1 %v887_v49 }
 0x1e8   : > { %1697 = vmatpush3.msra.mxu0 %v1117_v3  ;;  %1549 = vmatpush3.msra.mxu1 %v1095_v5 }
 0x1e9   : > { %1698 = vmatprep.subr.mxu0 %v1847_v4  ;;  %1550 = vmatprep.subr.mxu1 %v1110_v6 }
 0x1ea   : > { %1699 = vmatpush3.msra.mxu0 %v1116_v7  ;;  %1551 = vmatpush3.msra.mxu1 %v1094_v8 }
 0x1eb   : > { %1700 = vmatprep.subr.mxu0 %v1847_v4  ;;  %1552 = vmatprep.subr.mxu1 %v1109_v9 }
 0x1ec   : > { %1701 = vmatpush3.msra.mxu0 %v1115_v10  ;;  %1553 = vmatpush3.msra.mxu1 %v1093_v11 }
 0x1ed   : > { %1702 = vmatprep.subr.mxu0 %v1847_v4  ;;  %1554 = vmatprep.subr.mxu1 %v1108_v12 }
 0x1ee   : > { %1703 = vmatpush3.msra.mxu0 %v1114_v13  ;;  %1555 = vmatpush3.msra.mxu1 %v1092_v14 }
 0x1ef   : > { %1704 = vmatprep.subr.mxu0 %v1847_v4  ;;  %1556 = vmatprep.subr.mxu1 %v1107_v15  ;;  %v1104_v4 = vld [vmem:[%s2717_s8 + $0xb8] sm:$0xff] }
 0x1f0   : > { %1705 = vmatpush3.msra.mxu0 %v1113_v16  ;;  %1557 = vmatpush3.msra.mxu1 %v1091_v17 }
 0x1f1   : > { %1707 = vmatmul.mubr.msk.f32.vlgmr.msra.gmra.mxu0 %vm935_vm2, %v888_v63  ;;  %1558 = vmatprep.subr.mxu1 %v1106_v18 }
 0x1f2   : > { %1559 = vmatpush3.msra.mxu1 %v1090_v19 }
 0x1f3   : > { %1560 = vmatprep.subr.mxu1 %v1105_v20 }
 0x1f4   : > { %1561 = vmatpush3.msra.mxu1 %v1089_v21 }
 0x1f5   : > { %1562 = vmatprep.subr.mxu1 %v1104_v4 }
 0x1f6   : > { %1563 = vmatpush3.msra.mxu1 %v1088_v22 }
 0x1f7   : > { %1564 = vmatprep.subr.mxu1 %v1103_v23 }
 0x1f8   : > { %1565 = vmatpush3.msra.mxu1 %v1087_v24 }
 0x1f9   : > { %1566 = vmatprep.subr.mxu1 %v1102_v25 }
 0x1fa   : > { %1567 = vmatpush3.msra.mxu1 %v1086_v26 }
 0x1fb   : > { %1568 = vmatprep.subr.mxu1 %v1101_v27 }
 0x1fc   : > { %1569 = vmatpush3.msra.mxu1 %v1085_v28 }
 0x1fd   : > { %1570 = vmatprep.subr.mxu1 %v1100_v29 }
 0x1fe   : > { %1571 = vmatpush3.msra.mxu1 %v1084_v30 }
 0x1ff   : > { %1572 = vmatprep.subr.mxu1 %v1099_v31 }
 0x200   : > { %1573 = vmatpush3.msra.mxu1 %v1083_v32 }
 0x201   : > { %1574 = vmatprep.subr.mxu1 %v1098_v33 }
 0x202   : > { %1575 = vmatpush3.msra.mxu1 %v1082_v34 }
 0x203   : > { %1576 = vmatprep.subr.mxu1 %v1097_v35 }
 0x204   : > { %1577 = vmatpush3.msra.mxu1 %v1081_v36 }
 0x205   : > { %1191 = vmatmul.mubr.f32.vlgmr.msra.gmra.mxu1 %v2483_v50 }
 0x296   : > { %v1529_v37 = vpop.f32.mrf.mxu0 }
 0x298   : > { %v1530_v38 = vpop.f32.mrf.mxu0 }
 0x299   : > { %v1531_v39 = vadd.f32 %v1530_v38, %v1529_v37 }
 0x29b   : > { %v1006_v41 = vadd.f32 %v1531_v39, %v934_v40 }
 0x2a5   : > { %v1075_v42 = vpop.f32.mrf.mxu1 }
 0x2a6   : > { %v1076_v43 = vadd.f32 %v1075_v42, %v1006_v41 }
 0x2a7   : > { %v1679_v44 = vpop.f32.mrf.mxu1 }
 0x2a8   : > { %1080 = vst.msk [vmem:[%s382_s26] sm:$0xff] %vm1079_vm3, %v1076_v43 }
 0x2a9   : > { %1768 = shalt.err (!%p1765_p3)
}
 0x2aa   : > { %s1769_s26 = scalar_lea.hbm %s2652_s27, 128  ;;  %s1773_s12 = scalar_lea.hbm %s2718_s9, 256 }
 0x2ab   : > { %p1770_p4 = scmp.ne.s32.totalorder %s2652_s27, %s1769_s26  ;;  %p1774_p9 = scmp.lt.s32.totalorder %s2652_s27, %s2718_s9 }
 0x2ac   : > { %p1775_p10 = scmp.lt.s32.totalorder %s1773_s12, %s1769_s26 }
 0x2ad   : > { %p1771_p7 = pnand %p1770_p4, %p1944_p5 }
 0x2ae   : > { %p1776_p11 = por %p1775_p10, %p1774_p9 }
 0x2af   : > { %p1772_p8 = pneg %p1771_p7 }
 0x2b1   : > { %p1777_p12 = pnand %p1776_p11, %p1772_p8 }
 0x2b3   : > { %1780 = shalt.err (!%p1777_p12)
}
 0x2b4   : > { %1709 = dma.vmem_to_hbm [thread:$0]  (%p1944_p5), %s1287_s28, 128, %s2652_s27, %s1268_s20   ;;  %v1262_v45 = vpop.f32.mrf.mxu0 }
 0x2b5   : > { %s2727_s11 = sshll.u32 %s2636_s0, 3  ;;  %s2728_s25 = sshll.u32 %s1927_s17, 7 }
 0x2b6   : > { %v1708_v46 = vpop.f32.mrf.mxu0  ;;  %s389_s18 = scalar_lea.vmem [#allocation4], %s2727_s11  ;;  %s1297_s30 = scalar_lea.hbm %s2719_s10, %s2728_s25 }
 0x2b7   : > { %s1299_s29 = sshll.u32 %s389_s18, 4  ;;  %s1273_s21 = scalar_lea.sflag [#allocation5], %s2636_s0  ;;  %s1300_s29 = int_to_ptr.vmem [resolvable:$true] %s1299_s29 }
 0x2b8   : > { %s1781_s12 = scalar_lea.vmem %s1300_s29, 128  ;;  %s1850_s28 = smov [#allocation4]  }
 0x2b9   : > { %p1782_p13 = scmp.ne.s32.totalorder %s1300_s29, %s1781_s12  ;;  %s1785_s27 = sshll.u32 %s1850_s28, 4  ;;  %s1786_s27 = int_to_ptr.vmem [resolvable:$false] %s1785_s27 }
 0x2ba   : > { %s1787_s20 = scalar_lea.vmem %s1786_s27, 256  ;;  %p1788_p2 = scmp.lt.s32.totalorder %s1300_s29, %s1786_s27 }
 0x2bb   : > { %p1783_p0 = pnand %p1782_p13, %p1944_p5  ;;  %p1789_p3 = scmp.lt.s32.totalorder %s1787_s20, %s1781_s12 }
 0x2bd   : > { %p1784_p1 = pneg %p1783_p0  ;;  %p1790_p4 = por %p1789_p3, %p1788_p2 }
 0x2bf   : > { %p1791_p7 = pnand %p1790_p4, %p1784_p1 }
 0x2c5   : > { %v1578_v47 = vpop.f32.mrf.mxu1 }
 0x2c7   : > { %v1579_v48 = vpop.f32.mrf.mxu1 }
 0x2c8   : > { %v1580_v49 = vadd.f32 %v1579_v48, %v1578_v47 }
 0x2ca   : > { %v1263_v50 = vadd.f32 %v1580_v49, %v1262_v45 }
 0x2cc   : > { %1266 = vst.msk [vmem:[%s389_s18] sm:$0xff] %vm741_vm1, %v1263_v50 }
 0x2cd   : > { %1794 = shalt.err (!%p1791_p7)
}
 0x2ce   : > { %s1795_s17 = scalar_lea.hbm %s1297_s30, 128  ;;  %s1799_s18 = scalar_lea.hbm %s2719_s10, 256 }
 0x2cf   : > { %p1796_p8 = scmp.ne.s32.totalorder %s1297_s30, %s1795_s17  ;;  %p1800_p11 = scmp.lt.s32.totalorder %s1297_s30, %s2719_s10 }
 0x2d0   : > { %p1801_p12 = scmp.lt.s32.totalorder %s1799_s18, %s1795_s17 }
 0x2d1   : > { %p1797_p9 = pnand %p1796_p8, %p1944_p5 }
 0x2d2   : > { %p1802_p13 = por %p1801_p12, %p1800_p11 }
 0x2d3   : > { %p1798_p10 = pneg %p1797_p9 }
 0x2d5   : > { %p1803_p0 = pnand %p1802_p13, %p1798_p10 }
 0x2d7   : > { %1806 = shalt.err (!%p1803_p0)
}
 0x2d8   : > { %1710 = dma.vmem_to_hbm [thread:$0]  (%p1944_p5), %s1300_s29, 128, %s1297_s30, %s1273_s21  }
 0x2d9 PF: > { %p1720_p1 = scmp.ge.s32.totalorder %s1845_s16, 2  ;;  %s1311_s26 = sand.u32 1, %s1833_s13  }
 0x2da   : > { %s1312_s12 = scalar_lea.sflag [#allocation3], %s1311_s26 }
 0x2db   : > { %p1714_p2 = pnand %p1720_p1, %p1948_p6 }
 0x2dd   : > { %p1715_p3 = pneg %p1714_p2 }
 0x2df   : > { %1824 = dma.done.wait (%p1715_p3), %s1312_s12, 128  }
 0x2e0   : > { %1826 = vsyncadd (%p1715_p3), %s1312_s12, 4294967168  ;;  %s1321_s28 = scalar_lea.sflag [#allocation5], %s1311_s26 }
 0x2e1   : > { %1828 = dma.done.wait (%p1715_p3), %s1321_s28, 128  }
 0x2e2   : > { %1830 = vsyncadd (%p1715_p3), %s1321_s28, 4294967168  ;;  %s2729_s23 = sld [smem:[#allocation8_spill]]  ;;  %p24_p5 = scmp.ge.s32.totalorder %s1931_s19, 4  }
 0x2e3   : > { %s2730_s13 = smov %s1837_s14  ;;  %s2731_s14 = smov %s1841_s15 }
 0x2e4   : > { %s2733_s16 = smov %s1931_s19  ;;  %26 = sbr.rel (!%p24_p5) target bundleno = 7 (0x7), region = 114 }
 0x2e8   : > { %s2732_s15 = smov %s2729_s23 }
 0x2e9   :  { %1326 = vsyncpa [#allocation3], 1 }
 0x2ea   :  { %1328 = vsyncpa [#allocation3 + $0x1], 1 }
 0x2eb   :  { %1329 = vsyncpa [#allocation5], 1 }
 0x2ec   :  { %1331 = vsyncpa [#allocation5 + $0x1], 1 }

</bundles_post_ra>
